<compile_context>
chip_gen: v7x
topology: tpu7x:2x2x1
jax: 0.10.0
libtpu: 0.0.40
codegen_flags: <defaults>
</compile_context>

<pallas_src>
import jax
import jax.numpy as jnp
from jax.experimental import pallas as pl
from jax.experimental.pallas import tpu as pltpu

LANE = 128  # TPU vreg lane width; last dim of the 2D slab maps here.

_TARGET_BLOCK_BYTES = 8 << 20   # ~8 MiB/block: >90% of v7x HBM roofline.
_MAX_BLOCK_BYTES = 10 << 20     # cap: 4x double-buffer must stay < 64 MiB (v7x physical VMEM).


def _tanh_kernel(x_ref, o_ref):
    # Elementwise tanh on the whole VMEM tile. The transcendental goes to the EUP
    # (free VLIW slot relative to the DMA-bound critical path); the kernel is
    # HBM-bandwidth bound, never compute bound.
    o_ref[...] = jnp.tanh(x_ref[...])


def _round_up(n: int, m: int) -> int:
    return ((n + m - 1) // m) * m


def tanh_pallas(
    x: jax.Array,
    *,
    block_bytes: int = _TARGET_BLOCK_BYTES,
    inplace: bool = False,
    core_parallel: bool = False,
) -> jax.Array:
    """Elementwise tanh via a Pallas TPU kernel. Any shape / float dtype.

    block_bytes is sweepable; it is clamped so the double-buffered in+out
    footprint stays within v7x's 64 MiB physical VMEM.
    """
    orig_shape = x.shape
    orig_dtype = x.dtype
    n = x.size
    if n == 0:
        return x

    # Ragged element counts: padding + slicing would add two full extra HBM
    # passes around a kernel whose entire cost is two passes. Fused XLA tanh is
    # already at roofline there, so just use it (per perf review).
    if n % LANE != 0:
        return jnp.tanh(x)

    itemsize = jnp.dtype(orig_dtype).itemsize
    # Packed sublane multiple: f32 -> 8, bf16 -> 16, int8/fp8 -> 32.
    sublane = 8 * max(1, 4 // itemsize)

    rows = n // LANE
    x2d = jnp.ravel(x).reshape(rows, LANE)  # metadata-only reshape of a contiguous array

    # Dtype-aware tile rows from a byte budget, clamped for small inputs and
    # kept sublane-aligned.
    bb = int(min(max(block_bytes, LANE * itemsize * sublane), _MAX_BLOCK_BYTES))
    tile_rows = max(sublane, (bb // (LANE * itemsize)) // sublane * sublane)
    tr = max(sublane, _round_up(min(tile_rows, rows), sublane))
    grid = (pl.cdiv(rows, tr),)  # Pallas masks the ragged last block.

    actual_block_bytes = tr * LANE * itemsize
    # Double-buffered input + output (4x block) plus headroom; keep well below
    # v7x's 64 MiB physical VMEM per TensorCore.
    vmem_limit = int(min(max(4 * actual_block_bytes + (2 << 20), 16 << 20), 48 << 20))

    cost = pl.CostEstimate(
        flops=0,
        transcendentals=n,
        bytes_accessed=2 * n * itemsize,
    )

    semantics = (pltpu.CORE_PARALLEL,) if core_parallel else ("parallel",)

    out2d = pl.pallas_call(
        _tanh_kernel,
        out_shape=jax.ShapeDtypeStruct((rows, LANE), orig_dtype),
        grid_spec=pltpu.PrefetchScalarGridSpec(
            num_scalar_prefetch=0,
            grid=grid,
            in_specs=[pl.BlockSpec((tr, LANE), lambda i: (i, 0))],
            out_specs=pl.BlockSpec((tr, LANE), lambda i: (i, 0)),
        ),
        compiler_params=pltpu.CompilerParams(
            dimension_semantics=semantics,
            vmem_limit_bytes=vmem_limit,
        ),
        cost_estimate=cost,
        input_output_aliases={0: 0} if inplace else {},
    )(x2d)

    return out2d.reshape(orig_shape)


class TanhModule:
    """Mirror of the PyTorch Tanh nn.Module."""

    def __init__(self, inplace: bool = False):
        # JAX is functional; `inplace` only enables output/input buffer aliasing.
        self.inplace = inplace

    def __call__(self, x):
        return tanh_pallas(x, inplace=self.inplace)


if __name__ == "__main__":
    key = jax.random.PRNGKey(0)

    # NCHW input, same convention as PyTorch conv feature maps (2048 elems, lane-aligned).
    x = jax.random.normal(key, (2, 4, 16, 16), dtype=jnp.float32)
    mod = TanhModule(inplace=False)
    y = jax.block_until_ready(mod(x))
    ref = jnp.tanh(x)
    assert y.shape == x.shape and y.dtype == x.dtype
    assert jnp.allclose(y, ref, atol=1e-6, rtol=1e-6)

    # bf16 path exercises the dtype-aware (bytes-based) tiling.
    xb = jax.random.normal(jax.random.PRNGKey(2), (8, 256), dtype=jnp.bfloat16)
    yb = jax.block_until_ready(tanh_pallas(xb))
    assert yb.shape == xb.shape and yb.dtype == xb.dtype
    assert jnp.allclose(yb.astype(jnp.float32), jnp.tanh(xb.astype(jnp.float32)),
                        atol=1e-2, rtol=1e-2)

    # Ragged case (element count not a multiple of 128) uses the fused-jnp fallback.
    x2 = jax.random.normal(jax.random.PRNGKey(1), (3, 5, 7), dtype=jnp.float32)
    y2 = jax.block_until_ready(tanh_pallas(x2))
    assert y2.shape == x2.shape and y2.dtype == x2.dtype
    assert jnp.allclose(y2, jnp.tanh(x2), atol=1e-6, rtol=1e-6)

    print("KERNEL_OK")
</pallas_src>

<mosaic_0001>
module attributes {stable_mosaic.version = 11 : i64} {
  func.func @_tanh_kernel(%arg0: i32, %arg1: memref<16x128xf32, #tpu.memory_space<vmem>>, %arg2: memref<16x128xf32, #tpu.memory_space<vmem>>) attributes {dimension_semantics = [#tpu.dimension_semantics<parallel>], iteration_bounds = array<i64: 1>, scalar_prefetch = 0 : i64, scratch_operands = 0 : i64, tpu.core_type = #tpu.core_type<tc>, window_params = [{transform_indices = @transform_0, window_bounds = array<i64: 16, 128>}, {transform_indices = @transform_1, window_bounds = array<i64: 16, 128>}]} {
    %c0 = arith.constant 0 : index
    %c0_0 = arith.constant 0 : index
    %0 = vector.load %arg1[%c0, %c0_0] : memref<16x128xf32, #tpu.memory_space<vmem>>, vector<16x128xf32>
    %1 = math.tanh %0 : vector<16x128xf32>
    %c0_1 = arith.constant 0 : index
    %c0_2 = arith.constant 0 : index
    %2 = vector.load %arg2[%c0_1, %c0_2] : memref<16x128xf32, #tpu.memory_space<vmem>>, vector<16x128xf32>
    tpu.vector_store %arg2[%c0_1, %c0_2], %1 {strides = array<i32>} : memref<16x128xf32, #tpu.memory_space<vmem>>, vector<16x128xf32>,
    return
  }
  func.func @transform_0(%arg0: i32) -> (i32, i32) {
    %c0_i32 = arith.constant 0 : i32
    %c0_i32_0 = arith.constant 0 : i32
    return %arg0, %c0_i32 : i32, i32
  }
  func.func @transform_1(%arg0: i32) -> (i32, i32) {
    %c0_i32 = arith.constant 0 : i32
    %c0_i32_0 = arith.constant 0 : i32
    return %arg0, %c0_i32 : i32, i32
  }
}

</mosaic_0001>

<bundles_post_ra>
// kernel: tpu_custom_call.1
= control target key start
LH: loop header
LB: loop body
LE: loop exit
PB: predicated region body
PF: predicated region fallthrough
CT: control target
= control target key end

     0   :  { %6 = vsyncpa [#allocation3], 0  ;;  %s146_s0 = inlined_call_operand.hbm [shape: f32[16,128], index: 0, kind: input, shape index: {}]   ;;  %s147_s1 = inlined_call_operand.hbm [shape: f32[16,128], index: 1, kind: output, shape index: {}]  }
   0x1   :  { %7 = vsyncpa [#allocation4], 0  ;;  %s102_s6 = smov [#allocation2]   ;;  %s54_s10 = scalar_lea.hbm %s146_s0, 256 }
   0x2   :  { %s13_s7 = sshll.u32 %s102_s6, 4  ;;  %p55_p0 = scmp.ne.s32.totalorder %s146_s0, %s54_s10  ;;  %s14_s7 = int_to_ptr.vmem [resolvable:$true] %s13_s7 }
   0x3   :  { %p58_p1 = scmp.lt.u32.totalorder %s54_s10, %s146_s0 }
   0x5   :  { %p60_p2 = pnand %p58_p1, %p55_p0 }
   0x7   :  { %63 = shalt.err (!%p60_p2)
}
   0x8   :  { %s64_s15 = scalar_lea.vmem %s14_s7, 256  ;;  %p69_p4 = scmp.lt.s32.totalorder %s14_s7, %s14_s7 }
   0x9   :  { %p65_p3 = scmp.ne.s32.totalorder %s14_s7, %s64_s15  ;;  %p70_p5 = scmp.lt.s32.totalorder %s64_s15, %s64_s15 }
   0xb   :  { %p71_p6 = por %p70_p5, %p69_p4 }
   0xd   :  { %p72_p7 = pnand %p71_p6, %p65_p3 }
   0xf   :  { %75 = shalt.err (!%p72_p7)
}
  0x10   :  { %s103_s16 = smov 128   ;;  %s104_s17 = smov 8  }
  0x11   :  { %19 = dma.hbm_to_vmem [thread:$0]  %s146_s0, 256, %s14_s7, [#allocation3], %s103_s16, %s103_s16, %s104_s17  }
  0x12   :  { %98 = dma.done.wait [#allocation3], 256  }
  0x13   :  { %99 = vsyncadd [#allocation3], 4294967040  ;;  %v23_v0 = vld [vmem:[#allocation2] sm:$0xff]  ;;  %v24_v1 = vld [vmem:[#allocation2 + $0x8] sm:$0xff]  ;;  %s105_s20 = smov [#allocation5]  }
  0x14   :  { %50 = vtanh.f32 %v23_v0  ;;  %s34_s21 = sshll.u32 %s105_s20, 4  ;;  %s35_s21 = int_to_ptr.vmem [resolvable:$true] %s34_s21 }
  0x15   :  { %52 = vtanh.f32 %v24_v1  ;;  %s76_s22 = scalar_lea.vmem %s35_s21, 256  ;;  %p81_p9 = scmp.lt.s32.totalorder %s35_s21, %s35_s21 }
  0x16   :  { %p77_p8 = scmp.ne.s32.totalorder %s35_s21, %s76_s22  ;;  %p82_p10 = scmp.lt.s32.totalorder %s76_s22, %s76_s22 }
  0x18   :  { %p83_p11 = por %p82_p10, %p81_p9 }
  0x1a   :  { %p84_p12 = pnand %p83_p11, %p77_p8 }
  0x1e   :  { %v51_v2 = vpop.eup %50 }
  0x1f   :  { %v53_v3 = vpop.eup %52  ;;  %27 = vst [vmem:[#allocation5] sm:$0xff] %v51_v2 }
  0x20   :  { %28 = vst [vmem:[#allocation5 + $0x8] sm:$0xff] %v53_v3 }
  0x21   :  { %87 = shalt.err (!%p84_p12)
}
  0x22   :  { %s88_s24 = scalar_lea.hbm %s147_s1, 256 }
  0x23   :  { %p89_p13 = scmp.ne.s32.totalorder %s147_s1, %s88_s24  ;;  %p92_p0 = scmp.lt.u32.totalorder %s88_s24, %s147_s1 }
  0x25   :  { %p94_p1 = pnand %p92_p0, %p89_p13 }
  0x27   :  { %97 = shalt.err (!%p94_p1)
}
  0x28   :  { %40 = dma.vmem_to_hbm [thread:$0]  %s35_s21, 256, %s147_s1, [#allocation4], %s103_s16, %s103_s16, %s104_s17  }
  0x29   :  { %100 = dma.done.wait [#allocation4], 256  }
  0x2a   :  { %101 = vsyncadd [#allocation4], 4294967040 }
  0x2b   :  { %44 = vsyncpa [#allocation3], 1 }
  0x2c   :  { %45 = vsyncpa [#allocation4], 1 }

</bundles_post_ra>
